<compile_context>
chip_gen: v7x
topology: tpu7x:2x2x1
jax: 0.10.0
libtpu: 0.0.40
codegen_flags: <defaults>
</compile_context>

<pallas_src>
import jax
import jax.numpy as jnp
from jax import lax
from jax.experimental import pallas as pl
from jax.experimental.pallas import tpu as pltpu


def _round_up(x, m):
    return ((x + m - 1) // m) * m


def _cdiv(a, b):
    return (a + b - 1) // b


def spatial_transformer(src, flow, *, tile_n_cap=512):
    B, C, H, W = src.shape
    Bf, two, Ho, Wo = flow.shape
    assert B == Bf and two == 2
    HWo = Ho * Wo

    # ---- wrapper-side per-pixel sample coordinates (hoisted out of kernel) --
    # torch module:  norm   = 2*((grid + flow)/(S_out-1) - 0.5)
    # grid_sample:   unnorm = ((norm + 1)*S_in - 1)/2
    # folded:        i      = (S_in/(S_out-1))*(grid + flow) - 0.5
    # TODO(synk): Ho==1 / Wo==1 degenerates in torch via a division by zero
    # (inf/nan sampling); guarded here with max(., 1) instead of reproducing it.
    ay = float(H) / float(max(Ho - 1, 1))
    ax = float(W) / float(max(Wo - 1, 1))
    gy, gx = jnp.meshgrid(jnp.arange(Ho, dtype=jnp.float32),
                          jnp.arange(Wo, dtype=jnp.float32), indexing="ij")
    iy = ay * (gy[None] + flow[:, 0].astype(jnp.float32)) - 0.5
    ix = ax * (gx[None] + flow[:, 1].astype(jnp.float32)) - 0.5
    coords = jnp.stack([iy.reshape(B, HWo), ix.reshape(B, HWo)], axis=1)

    # ---- lane-dense tiling of the output-pixel axis -------------------------
    hwo_pad = _round_up(HWo, 128)
    tile_n = min(_round_up(tile_n_cap, 128), hwo_pad)
    # v7x megacore occupancy: keep >= 2 steps across the two parallel axes.
    if B * _cdiv(hwo_pad, tile_n) < 2 and tile_n > 128:
        tile_n = _round_up(tile_n // 2, 128)
    NO = _round_up(HWo, tile_n)
    if NO != HWo:
        # out-of-range sentinel -> padded columns sample all-zeros
        coords = jnp.pad(coords, ((0, 0), (0, 0), (0, NO - HWo)),
                         constant_values=-4.0)

    # src as (B, C*H, W): contiguous reshape only; W is the MXU contraction
    # (lane) axis.  Kept in f32 (review: no bf16 casts; MXU has slack).
    src_flat = src.reshape(B, C * H, W).astype(jnp.float32)
    # TODO(synk): for very large C*H*W (tens of MiB) the W axis would need
    # tiling + accumulation; a full per-batch image fits VMEM at typical
    # registration sizes so it is kept resident here.

    def kernel(coords_ref, src_ref, out_ref):
        c = coords_ref[0]                              # (2, tile_n) f32
        iy_t = c[0:1, :]
        ix_t = c[1:2, :]

        y0f = jnp.floor(iy_t)
        wy1 = iy_t - y0f
        wy0 = 1.0 - wy1
        x0f = jnp.floor(ix_t)
        wx1 = ix_t - x0f
        wx0 = 1.0 - wx1
        y0 = y0f.astype(jnp.int32)                     # (1, tile_n)
        x0 = x0f.astype(jnp.int32)

        # Separable weight matrices.  A corner whose index is outside
        # [0, H-1] / [0, W-1] matches no iota row -> weight 0 (zeros padding);
        # validity factorizes exactly across the two axes.
        wi = lax.broadcasted_iota(jnp.int32, (W, tile_n), 0)
        dx = wi - x0
        rx = jnp.where(dx == 0, wx0, 0.0) + jnp.where(dx == 1, wx1, 0.0)

        hi = lax.broadcasted_iota(jnp.int32, (H, tile_n), 0)
        dy = hi - y0
        ry = jnp.where(dy == 0, wy0, 0.0) + jnp.where(dy == 1, wy1, 0.0)

        # x-contraction on the MXU: (C*H, W) @ (W, tile_n) -> (C*H, tile_n)
        u = jnp.dot(src_ref[0], rx,
                    precision=jax.lax.Precision.HIGHEST,
                    preferred_element_type=jnp.float32)
        # y-contraction on the VPU: multiply by Ry and reduce over H
        u = u.reshape(C, H, tile_n)
        out = jnp.sum(u * ry[None, :, :], axis=1)      # (C, tile_n)
        out_ref[0] = out.astype(out_ref.dtype)

    out_flat = pl.pallas_call(
        kernel,
        out_shape=jax.ShapeDtypeStruct((B, C, NO), src.dtype),
        grid_spec=pltpu.PrefetchScalarGridSpec(
            num_scalar_prefetch=0,
            grid=(B, NO // tile_n),
            in_specs=[
                pl.BlockSpec((1, 2, tile_n), lambda b, n: (b, 0, n)),
                # constant in n -> DMA'd once per batch, resident across n-tiles
                pl.BlockSpec((1, C * H, W), lambda b, n: (b, 0, 0)),
            ],
            out_specs=pl.BlockSpec((1, C, tile_n), lambda b, n: (b, 0, n)),
        ),
        compiler_params=pltpu.CompilerParams(
            dimension_semantics=("parallel", "parallel"),
            # >= default scoped limit on v5e/v6e/v7x; ample for these tiles.
            vmem_limit_bytes=32 * 1024 * 1024,
        ),
    )(coords, src_flat)

    return out_flat[:, :, :HWo].reshape(B, C, Ho, Wo)


def reference_forward(src, flow):
    """Pure-JAX f32 reference of the torch module (grid_sample bilinear,
    padding_mode='zeros', align_corners=False)."""
    B, C, H, W = src.shape
    _, _, Ho, Wo = flow.shape
    row = jnp.arange(Ho, dtype=jnp.float32)[:, None]
    col = jnp.arange(Wo, dtype=jnp.float32)[None, :]
    ny = row + flow[:, 0]
    nx = col + flow[:, 1]
    y_norm = 2.0 * (ny / (Ho - 1) - 0.5)
    x_norm = 2.0 * (nx / (Wo - 1) - 0.5)
    iy = ((y_norm + 1.0) * H - 1.0) * 0.5
    ix = ((x_norm + 1.0) * W - 1.0) * 0.5
    x0 = jnp.floor(ix); x1 = x0 + 1.0
    y0 = jnp.floor(iy); y1 = y0 + 1.0
    wx1 = ix - x0; wx0 = 1.0 - wx1
    wy1 = iy - y0; wy0 = 1.0 - wy1
    vals = src.reshape(B, C, H * W)

    def corner(yc, xc, w):
        valid = ((xc >= 0.0) & (xc <= W - 1.0) &
                 (yc >= 0.0) & (yc <= H - 1.0)).astype(src.dtype)
        yi = jnp.clip(yc, 0, H - 1).astype(jnp.int32)
        xi = jnp.clip(xc, 0, W - 1).astype(jnp.int32)
        idx = (yi * W + xi).reshape(B, 1, Ho * Wo)
        idx = jnp.broadcast_to(idx, (B, C, Ho * Wo))
        g = jnp.take_along_axis(vals, idx, axis=2).reshape(B, C, Ho, Wo)
        return g * (valid * w)[:, None]

    return (corner(y0, x0, wy0 * wx0) + corner(y0, x1, wy0 * wx1) +
            corner(y1, x0, wy1 * wx0) + corner(y1, x1, wy1 * wx1))


if __name__ == "__main__":
    key = jax.random.PRNGKey(0)
    k_src, k_flow = jax.random.split(key)
    B, C, H, W = 2, 4, 16, 16
    src = jax.random.normal(k_src, (B, C, H, W), dtype=jnp.float32)
    # moderate displacements (a few pixels, some samples land out of bounds)
    flow = 3.0 * jax.random.normal(k_flow, (B, 2, H, W), dtype=jnp.float32)

    out = jax.jit(spatial_transformer)(src, flow)
    out = jax.block_until_ready(out)

    ref = reference_forward(src, flow)
    assert out.shape == (B, C, H, W)
    # f32 operands + precision=HIGHEST give ~1e-6 error; tolerance kept a bit
    # conservative only to be robust across MXU f32-pass implementations.
    max_err = float(jnp.max(jnp.abs(out - ref)))
    assert jnp.allclose(out, ref, atol=1e-2, rtol=1e-2), max_err
    print("KERNEL_OK")
</pallas_src>

<mosaic_0001>
module attributes {stable_mosaic.version = 11 : i64} {
  func.func @kernel(%arg0: i32, %arg1: i32, %arg2: memref<1x2x256xf32, #tpu.memory_space<vmem>>, %arg3: memref<1x64x16xf32, #tpu.memory_space<vmem>>, %arg4: memref<1x4x256xf32, #tpu.memory_space<vmem>>) attributes {dimension_semantics = [#tpu.dimension_semantics<parallel>, #tpu.dimension_semantics<parallel>], iteration_bounds = array<i64: 2, 1>, scalar_prefetch = 0 : i64, scratch_operands = 0 : i64, tpu.core_type = #tpu.core_type<tc>, window_params = [{transform_indices = @transform_0, window_bounds = array<i64: 1, 2, 256>}, {transform_indices = @transform_1, window_bounds = array<i64: 1, 64, 16>}, {transform_indices = @transform_2, window_bounds = array<i64: 1, 4, 256>}]} {
    %c0 = arith.constant 0 : index
    %c0_0 = arith.constant 0 : index
    %c0_1 = arith.constant 0 : index
    %0 = vector.load %arg2[%c0, %c0_0, %c0_1] : memref<1x2x256xf32, #tpu.memory_space<vmem>>, vector<1x2x256xf32>
    %1 = vector.shape_cast %0 : vector<1x2x256xf32> to vector<2x256xf32>
    %2 = vector.extract_strided_slice %1 {offsets = [0, 0], sizes = [1, 256], strides = [1, 1]} : vector<2x256xf32> to vector<1x256xf32>
    %3 = vector.extract_strided_slice %1 {offsets = [1, 0], sizes = [1, 256], strides = [1, 1]} : vector<2x256xf32> to vector<1x256xf32>
    %4 = math.floor %2 : vector<1x256xf32>
    %5 = arith.subf %2, %4 : vector<1x256xf32>
    %cst = arith.constant 1.000000e+00 : f32
    %6 = vector.broadcast %cst : f32 to vector<1x256xf32>
    %7 = arith.subf %6, %5 : vector<1x256xf32>
    %8 = math.floor %3 : vector<1x256xf32>
    %9 = arith.subf %3, %8 : vector<1x256xf32>
    %cst_2 = arith.constant 1.000000e+00 : f32
    %10 = vector.broadcast %cst_2 : f32 to vector<1x256xf32>
    %11 = arith.subf %10, %9 : vector<1x256xf32>
    %12 = arith.fptosi %4 : vector<1x256xf32> to vector<1x256xi32>
    %13 = arith.fptosi %8 : vector<1x256xf32> to vector<1x256xi32>
    %14 = tpu.iota {dimensions = array<i32: 0>} : vector<16x256xi32>
    %15 = vector.broadcast %13 : vector<1x256xi32> to vector<16x256xi32>
    %16 = arith.subi %14, %15 : vector<16x256xi32>
    %c0_i32 = arith.constant 0 : i32
    %17 = vector.broadcast %c0_i32 : i32 to vector<16x256xi32>
    %18 = arith.cmpi eq, %16, %17 : vector<16x256xi32>
    %cst_3 = arith.constant 0.000000e+00 : f32
    %19 = vector.shape_cast %11 : vector<1x256xf32> to vector<1x256xf32>
    %20 = vector.broadcast %19 : vector<1x256xf32> to vector<16x256xf32>
    %21 = vector.broadcast %cst_3 : f32 to vector<16x256xf32>
    %22 = arith.select %18, %20, %21 : vector<16x256xi1>, vector<16x256xf32>
    %c1_i32 = arith.constant 1 : i32
    %23 = vector.broadcast %c1_i32 : i32 to vector<16x256xi32>
    %24 = arith.cmpi eq, %16, %23 : vector<16x256xi32>
    %cst_4 = arith.constant 0.000000e+00 : f32
    %25 = vector.shape_cast %9 : vector<1x256xf32> to vector<1x256xf32>
    %26 = vector.broadcast %25 : vector<1x256xf32> to vector<16x256xf32>
    %27 = vector.broadcast %cst_4 : f32 to vector<16x256xf32>
    %28 = arith.select %24, %26, %27 : vector<16x256xi1>, vector<16x256xf32>
    %29 = arith.addf %22, %28 : vector<16x256xf32>
    %30 = tpu.iota {dimensions = array<i32: 0>} : vector<16x256xi32>
    %31 = vector.broadcast %12 : vector<1x256xi32> to vector<16x256xi32>
    %32 = arith.subi %30, %31 : vector<16x256xi32>
    %c0_i32_5 = arith.constant 0 : i32
    %33 = vector.broadcast %c0_i32_5 : i32 to vector<16x256xi32>
    %34 = arith.cmpi eq, %32, %33 : vector<16x256xi32>
    %cst_6 = arith.constant 0.000000e+00 : f32
    %35 = vector.shape_cast %7 : vector<1x256xf32> to vector<1x256xf32>
    %36 = vector.broadcast %35 : vector<1x256xf32> to vector<16x256xf32>
    %37 = vector.broadcast %cst_6 : f32 to vector<16x256xf32>
    %38 = arith.select %34, %36, %37 : vector<16x256xi1>, vector<16x256xf32>
    %c1_i32_7 = arith.constant 1 : i32
    %39 = vector.broadcast %c1_i32_7 : i32 to vector<16x256xi32>
    %40 = arith.cmpi eq, %32, %39 : vector<16x256xi32>
    %cst_8 = arith.constant 0.000000e+00 : f32
    %41 = vector.shape_cast %5 : vector<1x256xf32> to vector<1x256xf32>
    %42 = vector.broadcast %41 : vector<1x256xf32> to vector<16x256xf32>
    %43 = vector.broadcast %cst_8 : f32 to vector<16x256xf32>
    %44 = arith.select %40, %42, %43 : vector<16x256xi1>, vector<16x256xf32>
    %45 = arith.addf %38, %44 : vector<16x256xf32>
    %c0_9 = arith.constant 0 : index
    %c0_10 = arith.constant 0 : index
    %c0_11 = arith.constant 0 : index
    %46 = vector.load %arg3[%c0_9, %c0_10, %c0_11] : memref<1x64x16xf32, #tpu.memory_space<vmem>>, vector<1x64x16xf32>
    %47 = vector.shape_cast %46 : vector<1x64x16xf32> to vector<64x16xf32>
    %cst_12 = arith.constant dense<0.000000e+00> : vector<64x256xf32>
    %48 = tpu.matmul %47, %29, %cst_12 {dimension_numbers = #tpu.dot_dimension_numbers<[1], [0], [0], [1], [0, 0, 1, 1], [], []>, precision = #tpu.contract_precision<fp32>} : vector<64x16xf32>, vector<16x256xf32>, vector<64x256xf32> -> vector<64x256xf32>
    %49 = vector.shape_cast %48 : vector<64x256xf32> to vector<4x16x256xf32>
    %50 = vector.shape_cast %45 : vector<16x256xf32> to vector<1x16x256xf32>
    %51 = vector.broadcast %50 : vector<1x16x256xf32> to vector<4x16x256xf32>
    %52 = arith.mulf %49, %51 : vector<4x16x256xf32>
    %cst_13 = arith.constant dense<0.000000e+00> : vector<4x256xf32>
    %53 = vector.multi_reduction <add>, %52, %cst_13 [1] : vector<4x16x256xf32> to vector<4x256xf32>
    %c0_14 = arith.constant 0 : index
    %c0_15 = arith.constant 0 : index
    %c0_16 = arith.constant 0 : index
    %54 = vector.load %arg4[%c0_14, %c0_15, %c0_16] : memref<1x4x256xf32, #tpu.memory_space<vmem>>, vector<1x4x256xf32>
    %55 = vector.shape_cast %54 : vector<1x4x256xf32> to vector<4x256xf32>
    %56 = vector.shape_cast %53 : vector<4x256xf32> to vector<1x4x256xf32>
    tpu.vector_store %arg4[%c0_14, %c0_15, %c0_16], %56 {strides = array<i32>} : memref<1x4x256xf32, #tpu.memory_space<vmem>>, vector<1x4x256xf32>,
    return
  }
  func.func @transform_0(%arg0: i32, %arg1: i32) -> (i32, i32, i32) {
    %c0_i32 = arith.constant 0 : i32
    %c0_i32_0 = arith.constant 0 : i32
    return %arg0, %c0_i32, %arg1 : i32, i32, i32
  }
  func.func @transform_1(%arg0: i32, %arg1: i32) -> (i32, i32, i32) {
    %c0_i32 = arith.constant 0 : i32
    %c0_i32_0 = arith.constant 0 : i32
    %c0_i32_1 = arith.constant 0 : i32
    return %arg0, %c0_i32, %c0_i32_0 : i32, i32, i32
  }
  func.func @transform_2(%arg0: i32, %arg1: i32) -> (i32, i32, i32) {
    %c0_i32 = arith.constant 0 : i32
    %c0_i32_0 = arith.constant 0 : i32
    return %arg0, %c0_i32, %arg1 : i32, i32, i32
  }
}

</mosaic_0001>

<bundles_post_ra>
// kernel: spatial_transformer.1
= control target key start
LH: loop header
LB: loop body
LE: loop exit
PB: predicated region body
PF: predicated region fallthrough
CT: control target
= control target key end

     0   :  { %s1619_s9 = smov 0   ;;  %s1621_s10 = smov 0   ;;  %s1902_s0 = inlined_call_operand.vmem [shape: f32[2,2,256], index: 0, kind: input, shape index: {}]   ;;  %s1903_s1 = inlined_call_operand.vmem [shape: f32[2,64,16], index: 1, kind: input, shape index: {}]   ;;  %s1904_s2 = inlined_call_operand.vmem [shape: f32[2,4,256], index: 2, kind: output, shape index: {}]  }
   0x1   :  { %s1623_s11 = smov 0  }
   0x2 LB: > { %s24_s12 = sadd.s32 1, %s1597_s10  ;;  %p1436_p0 = scmp.ge.s32.totalorder %s1601_s11, 1  ;;  %s1601_s11 = sphi %s1623_s11, %s12_s11   ;;  %s1597_s10 = sphi %s1621_s10, %s1906_s10   ;;  %s1593_s9 = sphi %s1619_s9, %s1905_s9  }
   0x3   : > { %p26_p1 = scmp.ge.s32.totalorder %s24_s12, 2  ;;  %p143_p2 = scmp.lt.s32.totalorder %s1601_s11, 3 }
   0x5   : > { %s1908_s12 = smov (%p26_p1, %s24_s12), 0  ;;  %p144_p3 = pnand %p1436_p0, %p143_p2 }
   0x6   : > { %p179_p4 = scmp.lt.s32.totalorder (!%p144_p3), %s1593_s9, 1  ;;  %v208_v0 = vlaneseq (!%p144_p3)  ;;  %v1603_v1 = vmov (!%p144_p3), 0.0   ;;  %vm373_vm0 = vcmask (!%p144_p3), 130048  }
   0x7   : > { %147 = sbr.rel (%p144_p3) target bundleno = 374 (0x176), region = 28  ;;  %466 = vmatprep.mubr.f32.mxu1 (!%p144_p3), %v1603_v1  ;;  %901 = vmatprep.mubr.f32.mxu0 (!%p144_p3), %v1603_v1 }
   0x8   : > { %v1646_v2 = vshrl.u32 (!%p144_p3), %v208_v0, 7 }
   0xa   : > { %v213_v13 = vsub.s32 (!%p144_p3), 1, %v1646_v2  ;;  %v217_v14 = vsub.s32 (!%p144_p3), 3, %v1646_v2  ;;  %v1674_v20 = vadd.s32 (!%p144_p3), 8, %v1646_v2 }
   0xe   : > { %s1910_s9 = smov (!%p179_p4, %s1593_s9), 1 }
   0xf   : > { %s1445_s13 = sshll.u32 %s1910_s9, 2  ;;  %s1446_s14 = sshll.u32 %s1910_s9, 6 }
  0x10   : > { %s186_s17 = scalar_lea.vmem %s1902_s0, %s1445_s13  ;;  %s1651_s20 = scalar_lea.vmem %s1903_s1, %s1446_s14 }
  0x11   : > { %v203_v3 = vld [vmem:[%s186_s17] sm:$0xf]  ;;  %v366_v5 = vld [vmem:[%s1651_s20 + $0x8] sm:$0xff]  ;;  %v367_v10 = vld [vmem:[%s1651_s20 + $0x10] sm:$0xff]  ;;  %s1447_s21 = sshll.u32 %s1910_s9, 3 }
  0x12   : > { %v365_v4 = vld [vmem:[%s1651_s20] sm:$0xff]  ;;  %v204_v6 = vfloor.f32 %v203_v3  ;;  %v378_v8 = vsel %vm373_vm0, %v366_v5, 0  ;;  %v368_v16 = vld [vmem:[%s1651_s20 + $0x18] sm:$0xff]  ;;  %v381_v19 = vsel %vm373_vm0, %v367_v10, 0  ;;  %s201_s24 = scalar_lea.vmem %s1904_s2, %s1447_s21 }
  0x13   : > { %v375_v7 = vsel %vm373_vm0, %v365_v4, 0  ;;  %v1664_v15 = vand.u32 4294901760, %v378_v8  ;;  %v384_v26 = vsel %vm373_vm0, %v368_v16, 0  ;;  %v1689_v30 = vand.u32 4294901760, %v381_v19  ;;  %v369_v57 = vld [vmem:[%s1651_s20 + $0x20] sm:$0xff] }
  0x14   : > { %v1657_v9 = vand.u32 4294901760, %v375_v7  ;;  %v1660_v11 = vsub.f32 %v203_v3, %v204_v6  ;;  %v1552_v12 = vtrunc.f32 %v204_v6  ;;  %v1692_v36 = vand.u32 4294901760, %v384_v26 }
  0x15   : > { %v1687_v29 = vsub.f32 %v378_v8, %v1664_v15  ;;  %v1700_v44 = vsub.f32 %v381_v19, %v1689_v30  ;;  %v387_v5 = vsel %vm373_vm0, %v369_v57, 0 }
  0x16   : > { %v1668_v17 = vsub.f32 1.0, %v1660_v11  ;;  %v1670_v18 = vcvt.f32.s32 %v1552_v12  ;;  %v270_v21 = vrot.slane %v1660_v11, %v217_v14  ;;  %v1678_v22 = vsub.f32 %v375_v7, %v1657_v9  ;;  %v370_v12 = vld [vmem:[%s1651_s20 + $0x28] sm:$0xff] }
  0x17   : > { %v266_v28 = vrot.slane %v1660_v11, %v213_v13  ;;  %v480_v43 = vand.u32 4294901760, %v1687_v29  ;;  %v1709_v4 = vsub.f32 %v384_v26, %v1692_v36  ;;  %v491_v10 = vand.u32 4294901760, %v1700_v44 }
  0x18   : > { %v218_v23 = vrot.slane %v1670_v18, %v217_v14  ;;  %v243_v24 = vrot.slane %v1668_v17, %v217_v14  ;;  %v214_v25 = vrot.slane %v1670_v18, %v213_v13  ;;  %v239_v27 = vrot.slane %v1668_v17, %v213_v13 }
  0x19   : > { %v280_v34 = vrot.slane %v270_v21, %v213_v13  ;;  %v469_v35 = vand.u32 4294901760, %v1678_v22  ;;  %v276_v42 = vrot.slane %v266_v28, %v213_v13  ;;  %v481_v6 = vsub.f32 %v1687_v29, %v480_v43 }
  0x1a   : > { %v226_v31 = vrot.slane %v218_v23, %v213_v13  ;;  %v222_v32 = vrot.slane %v214_v25, %v213_v13  ;;  %v253_v33 = vrot.slane %v243_v24, %v213_v13  ;;  %v249_v41 = vrot.slane %v239_v27, %v213_v13 }
  0x1b   : > { %v470_v60 = vsub.f32 %v1678_v22, %v469_v35  ;;  %v1725_v25 = vand.u32 4294901760, %v387_v5  ;;  %v390_v28 = vsel %vm373_vm0, %v370_v12, 0 }
  0x1c   : > { %v228_v37 = vsub.s32 %v1646_v2, %v226_v31  ;;  %v230_v38 = vsub.s32 %v1674_v20, %v226_v31  ;;  %v227_v39 = vsub.s32 %v1646_v2, %v222_v32  ;;  %v229_v40 = vsub.s32 %v1674_v20, %v222_v32 }
  0x1d   : > { %v471_v19 = vand.u32 4294901760, %v470_v60  ;;  %v482_v31 = vand.u32 4294901760, %v481_v6 }
  0x1e   : > { %vm232_vm1 = vcmp.eq.s32.totalorder %v228_v37, 0  ;;  %vm234_vm2 = vcmp.eq.s32.totalorder %v230_v38, 0  ;;  %vm259_vm3 = vcmp.eq.s32.totalorder %v228_v37, 1  ;;  %vm261_vm4 = vcmp.eq.s32.totalorder %v230_v38, 1 }
  0x1f   : > { %v255_v45 = vsel %vm232_vm1, %v253_v33, 0.0  ;;  %v257_v46 = vsel %vm234_vm2, %v253_v33, 0.0  ;;  %v282_v47 = vsel %vm259_vm3, %v280_v34, 0.0  ;;  %v284_v48 = vsel %vm261_vm4, %v280_v34, 0.0  ;;  %v371_v34 = vld [vmem:[%s1651_s20 + $0x30] sm:$0xff] }
  0x20   : > { %v286_v49 = vadd.f32 %v282_v47, %v255_v45  ;;  %v288_v50 = vadd.f32 %v284_v48, %v257_v46  ;;  %vm231_vm5 = vcmp.eq.s32.totalorder %v227_v39, 0  ;;  %vm233_vm6 = vcmp.eq.s32.totalorder %v229_v40, 0 }
  0x21   : > { %v254_v51 = vsel %vm231_vm5, %v249_v41, 0.0  ;;  %v256_v52 = vsel %vm233_vm6, %v249_v41, 0.0  ;;  %vm258_vm7 = vcmp.eq.s32.totalorder %v227_v39, 1  ;;  %vm260_vm8 = vcmp.eq.s32.totalorder %v229_v40, 1 }
  0x22   : > { %v398_v53 = vand.u32 4294901760, %v286_v49  ;;  %v402_v54 = vand.u32 4294901760, %v288_v50  ;;  %v281_v55 = vsel %vm258_vm7, %v276_v42, 0.0  ;;  %v283_v56 = vsel %vm260_vm8, %v276_v42, 0.0 }
  0x23   : > { %v285_v58 = vadd.f32 %v281_v55, %v254_v51  ;;  %v287_v59 = vadd.f32 %v283_v56, %v256_v52  ;;  %v502_v40 = vand.u32 4294901760, %v1709_v4  ;;  %v492_v42 = vsub.f32 %v1700_v44, %v491_v10 }
  0x24   : > { %v1448_v61 = vpack.c.bf16 %v402_v54, %v398_v53  ;;  %v1706_v62 = vsub.f32 %v286_v49, %v398_v53  ;;  %v568_v63 = vsub.f32 %v288_v50, %v402_v54  ;;  %v1740_v45 = vsub.f32 %v387_v5, %v1725_v25  ;;  %v372_v50 = vld [vmem:[%s1651_s20 + $0x38] sm:$0xff] }
  0x25   : > { %v400_v0 = vand.u32 4294901760, %v285_v58  ;;  %v404_v3 = vand.u32 4294901760, %v287_v59  ;;  %v1742_v46 = vand.u32 4294901760, %v390_v28  ;;  %v393_v49 = vsel %vm373_vm0, %v371_v34, 0 }
  0x26   : > { %1449 = vmatprep.subr.bf16.mxu1 %v1448_v61  ;;  %1461 = vmatprep.subr.bf16.mxu0 %v1448_v61  ;;  %v557_v7 = vand.u32 4294901760, %v1706_v62  ;;  %v569_v8 = vand.u32 4294901760, %v568_v63  ;;  %v503_v52 = vsub.f32 %v1709_v4, %v502_v40  ;;  %v493_v53 = vand.u32 4294901760, %v492_v42 }
  0x27   : > { %v1718_v13 = vpack.c.bf16 %v404_v3, %v400_v0  ;;  %v1720_v14 = vsub.f32 %v285_v58, %v400_v0  ;;  %v1722_v16 = vsub.f32 %v287_v59, %v404_v3  ;;  %v513_v54 = vand.u32 4294901760, %v1740_v45 }
  0x28   : > { %v558_v21 = vsub.f32 %v1706_v62, %v557_v7  ;;  %v570_v23 = vsub.f32 %v568_v63, %v569_v8  ;;  %v1464_v24 = vpack.c.bf16 %v569_v8, %v557_v7  ;;  %v1754_v55 = vsub.f32 %v390_v28, %v1742_v46 }
  0x29   : > { %1451 = vmatpush1.bf16.msra.mxu1 %v1718_v13  ;;  %1463 = vmatpush1.bf16.msra.mxu0 %v1718_v13  ;;  %v563_v26 = vand.u32 4294901760, %v1720_v14  ;;  %v575_v27 = vand.u32 4294901760, %v1722_v16  ;;  %v1756_v56 = vand.u32 4294901760, %v393_v49  ;;  %v396_v57 = vsel %vm373_vm0, %v372_v50, 0 }
  0x2a   : > { %v559_v32 = vand.u32 4294901760, %v558_v21  ;;  %v571_v33 = vand.u32 4294901760, %v570_v23  ;;  %1465 = vmatprep.subr.bf16.mxu0 %v1464_v24  ;;  %v504_v58 = vand.u32 4294901760, %v503_v52  ;;  %v524_v59 = vand.u32 4294901760, %v1754_v55 }
  0x2b   : > { %v564_v37 = vsub.f32 %v1720_v14, %v563_v26  ;;  %v576_v38 = vsub.f32 %v1722_v16, %v575_v27  ;;  %v1466_v39 = vpack.c.bf16 %v575_v27, %v563_v26  ;;  %v1764_v60 = vsub.f32 %v393_v49, %v1756_v56 }
  0x2c   : > { %472 = vmatmul.mubr.f32.vlgmr.msra.gmra.mrb[0].mxu1 %v471_v19  ;;  %905 = vmatmul.mubr.f32.vlgmr.msra.gmra.mrb[0].mxu0 %v469_v35  ;;  %v1452_v41 = vpack.c.bf16 %v571_v33, %v559_v32  ;;  %v1456_v35 = vpack.c.bf16 %v568_v63, %v1706_v62  ;;  %v525_v63 = vsub.f32 %v1754_v55, %v524_v59  ;;  %vm1317_vm1 = vcmask 1041409  }
  0x2d   : > { %477 = vmatprep.mubr.f32.mxu1 %v1603_v1  ;;  %910 = vmatprep.mubr.f32.mxu0 %v1603_v1  ;;  %v565_v47 = vand.u32 4294901760, %v564_v37  ;;  %v577_v48 = vand.u32 4294901760, %v576_v38  ;;  %v535_v0 = vand.u32 4294901760, %v1764_v60  ;;  %v1458_v19 = vpack.c.bf16 %v1722_v16, %v1720_v14 }
  0x2e   : > { %1453 = vmatprep.subr.bf16.mxu1 %v1452_v41  ;;  %1467 = vmatpush1.bf16.msra.mxu0 %v1466_v39  ;;  %v526_v5 = vand.u32 4294901760, %v525_v63  ;;  %vm1319_vm2 = vcmask 1045509   ;;  %vm1322_vm3 = vcmask 1042434   ;;  %vm1324_vm4 = vcmask 1046534  }
  0x2f   : > { %v1454_v51 = vpack.c.bf16 %v577_v48, %v565_v47  ;;  %1469 = vmatprep.subr.bf16.mxu0 %v1448_v61  ;;  %v1766_v61 = vand.u32 4294901760, %v396_v57  ;;  %v536_v6 = vsub.f32 %v1764_v60, %v535_v0  ;;  %vm1327_vm5 = vcmask 1043459  }
  0x30   : > { %483 = vmatmul.mubr.f32.gmra.mrb[2].mxu1 %v482_v31  ;;  %914 = vmatmul.mubr.f32.gmra.mrb[2].mxu0 %v480_v43  ;;  %v514_v43 = vsub.f32 %v1740_v45, %v513_v54  ;;  %vm1329_vm6 = vcmask 1047559  }
  0x31   : > { %1455 = vmatpush1.bf16.msra.mxu1 %v1454_v51  ;;  %488 = vmatprep.mubr.f32.mxu1 %v1603_v1  ;;  %v1773_v3 = vsub.f32 %v396_v57, %v1766_v61  ;;  %v537_v8 = vand.u32 4294901760, %v536_v6 }
  0x32   : > { %919 = vmatprep.mubr.f32.mxu0 %v1603_v1  ;;  %1457 = vmatprep.subr.bf16.mxu1 %v1456_v35  ;;  %v515_v62 = vand.u32 4294901760, %v514_v43 }
  0x33   : > { %v546_v7 = vand.u32 4294901760, %v1773_v3 }
  0x34   : > { %494 = vmatmul.mubr.f32.gmra.mrb[4].mxu1 %v493_v53  ;;  %923 = vmatmul.mubr.f32.gmra.mrb[4].mxu0 %v491_v10 }
  0x35   : > { %499 = vmatprep.mubr.f32.mxu1 %v1603_v1  ;;  %928 = vmatprep.mubr.f32.mxu0 %v1603_v1  ;;  %v547_v10 = vsub.f32 %v1773_v3, %v546_v7 }
  0x37   : > { %v548_v12 = vand.u32 4294901760, %v547_v10 }
  0x38   : > { %505 = vmatmul.mubr.f32.gmra.mrb[6].mxu1 %v504_v58  ;;  %932 = vmatmul.mubr.f32.gmra.mrb[6].mxu0 %v502_v40 }
  0x39   : > { %510 = vmatprep.mubr.f32.mxu1 %v1603_v1  ;;  %937 = vmatprep.mubr.f32.mxu0 %v1603_v1 }
  0x3c   : > { %516 = vmatmul.mubr.f32.gmra.mrb[8].mxu1 %v515_v62  ;;  %941 = vmatmul.mubr.f32.gmra.mrb[8].mxu0 %v513_v54 }
  0x3d   : > { %521 = vmatprep.mubr.f32.mxu1 %v1603_v1  ;;  %946 = vmatprep.mubr.f32.mxu0 %v1603_v1 }
  0x40   : > { %527 = vmatmul.mubr.f32.gmra.mrb[10].mxu1 %v526_v5  ;;  %950 = vmatmul.mubr.f32.gmra.mrb[10].mxu0 %v524_v59 }
  0x41   : > { %532 = vmatprep.mubr.f32.mxu1 %v1603_v1  ;;  %955 = vmatprep.mubr.f32.mxu0 %v1603_v1 }
  0x44   : > { %538 = vmatmul.mubr.f32.gmra.mrb[12].mxu1 %v537_v8  ;;  %959 = vmatmul.mubr.f32.gmra.mrb[12].mxu0 %v535_v0 }
  0x45   : > { %543 = vmatprep.mubr.f32.mxu1 %v1603_v1  ;;  %964 = vmatprep.mubr.f32.mxu0 %v1603_v1 }
  0x48   : > { %549 = vmatmul.mubr.f32.gmra.mrb[14].mxu1 %v548_v12  ;;  %968 = vmatmul.mubr.f32.gmra.mrb[14].mxu0 %v546_v7 }
  0x49   : > { %639 = vmatprep.mubr.f32.mxu1 %v1603_v1  ;;  %1050 = vmatprep.mubr.f32.mxu0 %v1603_v1 }
  0x4c   : > { %641 = vmatmul.mubr.f32.vlgmr.msra.gmra.mrb[0].mxu1 %v1657_v9  ;;  %1052 = vmatmul.mubr.f32.vlgmr.msra.gmra.mrb[0].mxu0 %v1657_v9 }
  0x4d   : > { %646 = vmatprep.mubr.f32.mxu1 %v1603_v1  ;;  %1057 = vmatprep.mubr.f32.mxu0 %v1603_v1 }
  0x4e   : > { %1459 = vmatpush1.bf16.msra.mxu1 %v1458_v19  ;;  %1471 = vmatpush1.bf16.msra.mxu0 %v1718_v13 }
  0x50   : > { %648 = vmatmul.mubr.f32.gmra.mrb[2].mxu1 %v1664_v15  ;;  %1059 = vmatmul.mubr.f32.gmra.mrb[2].mxu0 %v1664_v15 }
  0x51   : > { %653 = vmatprep.mubr.f32.mxu1 %v1603_v1  ;;  %1064 = vmatprep.mubr.f32.mxu0 %v1603_v1 }
  0x54   : > { %655 = vmatmul.mubr.f32.gmra.mrb[4].mxu1 %v1689_v30  ;;  %1066 = vmatmul.mubr.f32.gmra.mrb[4].mxu0 %v1689_v30 }
  0x55   : > { %660 = vmatprep.mubr.f32.mxu1 %v1603_v1  ;;  %1071 = vmatprep.mubr.f32.mxu0 %v1603_v1 }
  0x58   : > { %662 = vmatmul.mubr.f32.gmra.mrb[6].mxu1 %v1692_v36  ;;  %1073 = vmatmul.mubr.f32.gmra.mrb[6].mxu0 %v1692_v36 }
  0x59   : > { %667 = vmatprep.mubr.f32.mxu1 %v1603_v1  ;;  %1078 = vmatprep.mubr.f32.mxu0 %v1603_v1 }
  0x5c   : > { %669 = vmatmul.mubr.f32.gmra.mrb[8].mxu1 %v1725_v25  ;;  %1080 = vmatmul.mubr.f32.gmra.mrb[8].mxu0 %v1725_v25 }
  0x5d   : > { %674 = vmatprep.mubr.f32.mxu1 %v1603_v1  ;;  %1085 = vmatprep.mubr.f32.mxu0 %v1603_v1 }
  0x60   : > { %676 = vmatmul.mubr.f32.gmra.mrb[10].mxu1 %v1742_v46  ;;  %1087 = vmatmul.mubr.f32.gmra.mrb[10].mxu0 %v1742_v46 }
  0x61   : > { %681 = vmatprep.mubr.f32.mxu1 %v1603_v1  ;;  %1092 = vmatprep.mubr.f32.mxu0 %v1603_v1 }
  0x64   : > { %683 = vmatmul.mubr.f32.gmra.mrb[12].mxu1 %v1756_v56  ;;  %1094 = vmatmul.mubr.f32.gmra.mrb[12].mxu0 %v1756_v56 }
  0x65   : > { %688 = vmatprep.mubr.f32.mxu1 %v1603_v1  ;;  %1099 = vmatprep.mubr.f32.mxu0 %v1603_v1 }
  0x68   : > { %690 = vmatmul.mubr.f32.gmra.mrb[14].mxu1 %v1766_v61  ;;  %1101 = vmatmul.mubr.f32.gmra.mrb[14].mxu0 %v1766_v61 }
  0x69   : > { %768 = vmatprep.mubr.f32.mxu1 %v1603_v1  ;;  %1175 = vmatprep.mubr.f32.mxu0 %v1603_v1 }
  0x6c   : > { %771 = vmatmul.mubr.f32.vlgmr.msra.gmra.mrb[0].mxu1 %v1678_v22  ;;  %1177 = vmatmul.mubr.f32.vlgmr.msra.gmra.mrb[0].mxu0 %v1657_v9  ;;  %v291_v9 = vsub.s32 0, %v1646_v2 }
  0x6d   : > { %776 = vmatprep.mubr.f32.mxu1 %v1603_v1  ;;  %1182 = vmatprep.mubr.f32.mxu0 %v1603_v1 }
  0x6e   : > { %v292_v22 = vrot.slane %v1670_v18, %v291_v9 }
  0x70   : > { %779 = vmatmul.mubr.f32.gmra.mrb[2].mxu1 %v1687_v29  ;;  %1184 = vmatmul.mubr.f32.gmra.mrb[2].mxu0 %v1664_v15  ;;  %v295_v15 = vsub.s32 2, %v1646_v2 }
  0x71   : > { %784 = vmatprep.mubr.f32.mxu1 %v1603_v1  ;;  %1189 = vmatprep.mubr.f32.mxu0 %v1603_v1 }
  0x72   : > { %v296_v29 = vrot.slane %v1670_v18, %v295_v15  ;;  %v320_v13 = vrot.slane %v1668_v17, %v295_v15  ;;  %v346_v16 = vrot.slane %v1660_v11, %v295_v15 }
  0x74   : > { %787 = vmatmul.mubr.f32.gmra.mrb[4].mxu1 %v1700_v44  ;;  %1191 = vmatmul.mubr.f32.gmra.mrb[4].mxu0 %v1689_v30  ;;  %v300_v30 = vrot.slane %v292_v22, %v291_v9  ;;  %v316_v44 = vrot.slane %v1668_v17, %v291_v9  ;;  %v356_v26 = vrot.slane %v346_v16, %v291_v9 }
  0x75   : > { %792 = vmatprep.mubr.f32.mxu1 %v1603_v1  ;;  %1196 = vmatprep.mubr.f32.mxu0 %v1603_v1 }
  0x76   : > { %v307_v21 = vsub.s32 %v1674_v20, %v300_v30  ;;  %v326_v24 = vrot.slane %v316_v44, %v291_v9 }
  0x78   : > { %795 = vmatmul.mubr.f32.gmra.mrb[6].mxu1 %v1709_v4  ;;  %1198 = vmatmul.mubr.f32.gmra.mrb[6].mxu0 %v1692_v36  ;;  %v304_v36 = vrot.slane %v296_v29, %v291_v9  ;;  %v305_v4 = vsub.s32 %v1646_v2, %v300_v30  ;;  %vm311_vm12 = vcmp.eq.s32.totalorder %v307_v21, 0  ;;  %vm337_vm13 = vcmp.eq.s32.totalorder %v307_v21, 1 }
  0x79   : > { %800 = vmatprep.mubr.f32.mxu1 %v1603_v1  ;;  %1203 = vmatprep.mubr.f32.mxu0 %v1603_v1  ;;  %v333_v31 = vsel %vm311_vm12, %v326_v24, 0.0 }
  0x7a   : > { %v306_v14 = vsub.s32 %v1646_v2, %v304_v36  ;;  %v308_v23 = vsub.s32 %v1674_v20, %v304_v36  ;;  %vm309_vm9 = vcmp.eq.s32.totalorder %v305_v4, 0  ;;  %vm335_vm10 = vcmp.eq.s32.totalorder %v305_v4, 1 }
  0x7b   : > { %v331_v17 = vsel %vm309_vm9, %v326_v24, 0.0 }
  0x7c   : > { %803 = vmatmul.mubr.f32.gmra.mrb[8].mxu1 %v1740_v45  ;;  %1205 = vmatmul.mubr.f32.gmra.mrb[8].mxu0 %v1725_v25  ;;  %v330_v25 = vrot.slane %v320_v13, %v291_v9  ;;  %vm310_vm11 = vcmp.eq.s32.totalorder %v306_v14, 0  ;;  %vm336_vm14 = vcmp.eq.s32.totalorder %v306_v14, 1  ;;  %vm312_vm15 = vcmp.eq.s32.totalorder %v308_v23, 0 }
  0x7d   : > { %808 = vmatprep.mubr.f32.mxu1 %v1603_v1  ;;  %1210 = vmatprep.mubr.f32.mxu0 %v1603_v1  ;;  %vm338_vm0 = vcmp.eq.s32.totalorder %v308_v23, 1  ;;  %v358_v34 = vsel %vm336_vm14, %v356_v26, 0.0 }
  0x7e   : > { %v332_v28 = vsel %vm310_vm11, %v330_v25, 0.0  ;;  %v334_v38 = vsel %vm312_vm15, %v330_v25, 0.0  ;;  %v360_v39 = vsel %vm338_vm0, %v356_v26, 0.0 }
  0x7f   : > { %v1869_v45 = vadd.f32 %v358_v34, %v332_v28  ;;  %v1871_v48 = vadd.f32 %v360_v39, %v334_v38 }
  0x80   : > { %811 = vmatmul.mubr.f32.gmra.mrb[10].mxu1 %v1754_v55  ;;  %1212 = vmatmul.mubr.f32.gmra.mrb[10].mxu0 %v1742_v46 }
  0x81   : > { %816 = vmatprep.mubr.f32.mxu1 %v1603_v1  ;;  %1217 = vmatprep.mubr.f32.mxu0 %v1603_v1 }
  0x84   : > { %819 = vmatmul.mubr.f32.gmra.mrb[12].mxu1 %v1764_v60  ;;  %1219 = vmatmul.mubr.f32.gmra.mrb[12].mxu0 %v1756_v56 }
  0x85   : > { %824 = vmatprep.mubr.f32.mxu1 %v1603_v1  ;;  %1224 = vmatprep.mubr.f32.mxu0 %v1603_v1  ;;  %v342_v1 = vrot.slane %v1660_v11, %v291_v9 }
  0x87   : > { %v352_v18 = vrot.slane %v342_v1, %v291_v9 }
  0x88   : > { %827 = vmatmul.mubr.f32.gmra.mrb[14].mxu1 %v1773_v3  ;;  %1226 = vmatmul.mubr.f32.gmra.mrb[14].mxu0 %v1766_v61 }
  0x89   : > { %v357_v27 = vsel %vm335_vm10, %v352_v18, 0.0  ;;  %v359_v32 = vsel %vm337_vm13, %v352_v18, 0.0 }
  0x8a   : > { %v1865_v41 = vadd.f32 %v357_v27, %v331_v17  ;;  %v1867_v42 = vadd.f32 %v359_v32, %v333_v31 }
 0x13f   : > { %v772_v2 = vpop.f32.mrb[0].mxu1  ;;  %v1178_v11 = vpop.f32.mrb[0].mxu0 }
 0x140   : > { %v1472_v20 = vadd.f32 %v1178_v11, %v772_v2  ;;  %v774_v33 = vpop.f32.mrb[1].mxu1  ;;  %v1180_v37 = vpop.f32.mrb[1].mxu0 }
 0x141   : > { %v1473_v40 = vadd.f32 %v1180_v37, %v774_v33 }
 0x142   : > { %v1232_v52 = vmul.f32 %v1472_v20, %v1865_v41 }
 0x143   : > { %v780_v46 = vpop.f32.mrb[2].mxu1  ;;  %v1185_v47 = vpop.f32.mrb[2].mxu0  ;;  %v1233_v54 = vmul.f32 %v1473_v40, %v1869_v45 }
 0x144   : > { %v1474_v49 = vadd.f32 %v1185_v47, %v780_v46  ;;  %v782_v50 = vpop.f32.mrb[3].mxu1  ;;  %v1187_v35 = vpop.f32.mrb[3].mxu0 }
 0x145   : > { %v1475_v51 = vadd.f32 %v1187_v35, %v782_v50 }
 0x146   : > { %v1234_v53 = vmul.f32 %v1474_v49, %v1867_v42 }
 0x147   : > { %v1235_v55 = vmul.f32 %v1475_v51, %v1871_v48  ;;  %v788_v56 = vpop.f32.mrb[4].mxu1  ;;  %v1192_v57 = vpop.f32.mrb[4].mxu0 }
 0x148   : > { %v1248_v58 = vadd.f32 %v1234_v53, %v1232_v52  ;;  %v1476_v43 = vadd.f32 %v1192_v57, %v788_v56  ;;  %v790_v59 = vpop.f32.mrb[5].mxu1  ;;  %v1194_v60 = vpop.f32.mrb[5].mxu0 }
 0x149   : > { %v1255_v61 = vadd.f32 %v1235_v55, %v1233_v54  ;;  %v1477_v62 = vadd.f32 %v1194_v60, %v790_v59 }
 0x14a   : > { %v1249_v63 = vrot.slane %v1248_v58, 4  ;;  %v1236_v15 = vmul.f32 %v1476_v43, %v1865_v41 }
 0x14b   : > { %v1256_v0 = vrot.slane %v1255_v61, 4  ;;  %v796_v3 = vpop.f32.mrb[6].mxu1  ;;  %v1199_v5 = vpop.f32.mrb[6].mxu0  ;;  %v1237_v30 = vmul.f32 %v1477_v62, %v1869_v45 }
 0x14c   : > { %v1250_v6 = vadd.f32 %v1249_v63, %v1248_v58  ;;  %v1478_v7 = vadd.f32 %v1199_v5, %v796_v3  ;;  %v798_v8 = vpop.f32.mrb[7].mxu1  ;;  %v1201_v10 = vpop.f32.mrb[7].mxu0 }
 0x14d   : > { %v1257_v12 = vadd.f32 %v1256_v0, %v1255_v61  ;;  %v1479_v19 = vadd.f32 %v1201_v10, %v798_v8 }
 0x14e   : > { %v1251_v9 = vrot.slane %v1250_v6, 2  ;;  %v1238_v22 = vmul.f32 %v1478_v7, %v1867_v42 }
 0x14f   : > { %v1258_v29 = vrot.slane %v1257_v12, 2  ;;  %v1239_v36 = vmul.f32 %v1479_v19, %v1871_v48  ;;  %v804_v44 = vpop.f32.mrb[8].mxu1  ;;  %v1206_v4 = vpop.f32.mrb[8].mxu0 }
 0x150   : > { %v1252_v1 = vadd.f32 %v1251_v9, %v1250_v6  ;;  %v1262_v13 = vadd.f32 %v1238_v22, %v1236_v15  ;;  %v1480_v14 = vadd.f32 %v1206_v4, %v804_v44  ;;  %v806_v16 = vpop.f32.mrb[9].mxu1  ;;  %v1208_v21 = vpop.f32.mrb[9].mxu0 }
 0x151   : > { %v1259_v23 = vadd.f32 %v1258_v29, %v1257_v12  ;;  %v1269_v24 = vadd.f32 %v1239_v36, %v1237_v30  ;;  %v1481_v18 = vadd.f32 %v1208_v21, %v806_v16 }
 0x152   : > { %v1253_v25 = vrot.slane %v1252_v1, 1  ;;  %v1263_v26 = vrot.slane %v1262_v13, 4  ;;  %v1240_v40 = vmul.f32 %v1480_v14, %v1865_v41 }
 0x153   : > { %v1260_v17 = vrot.slane %v1259_v23, 1  ;;  %v1270_v2 = vrot.slane %v1269_v24, 4  ;;  %v812_v27 = vpop.f32.mrb[10].mxu1  ;;  %v1213_v11 = vpop.f32.mrb[10].mxu0  ;;  %v1241_v50 = vmul.f32 %v1481_v18, %v1869_v45 }
 0x154   : > { %v1254_v28 = vadd.f32 %v1253_v25, %v1252_v1  ;;  %v1264_v31 = vadd.f32 %v1263_v26, %v1262_v13  ;;  %v1482_v32 = vadd.f32 %v1213_v11, %v812_v27  ;;  %v814_v20 = vpop.f32.mrb[11].mxu1  ;;  %v1215_v33 = vpop.f32.mrb[11].mxu0 }
 0x155   : > { %v1261_v34 = vadd.f32 %v1260_v17, %v1259_v23  ;;  %v1271_v37 = vadd.f32 %v1270_v2, %v1269_v24  ;;  %v1483_v38 = vadd.f32 %v1215_v33, %v814_v20 }
 0x156   : > { %v1265_v39 = vrot.slane %v1264_v31, 2  ;;  %v1242_v46 = vmul.f32 %v1482_v32, %v1867_v42 }
 0x157   : > { %v1312_v47 = vcombine.low %v1254_v28, %v1261_v34  ;;  %v1272_v49 = vrot.slane %v1271_v37, 2  ;;  %v1243_v35 = vmul.f32 %v1483_v38, %v1871_v48  ;;  %v820_v51 = vpop.f32.mrb[12].mxu1  ;;  %v1220_v52 = vpop.f32.mrb[12].mxu0 }
 0x158   : > { %v1266_v53 = vadd.f32 %v1265_v39, %v1264_v31  ;;  %v1276_v54 = vadd.f32 %v1242_v46, %v1240_v40  ;;  %v1484_v55 = vadd.f32 %v1220_v52, %v820_v51  ;;  %v822_v56 = vpop.f32.mrb[13].mxu1  ;;  %v1222_v57 = vpop.f32.mrb[13].mxu0 }
 0x159   : > { %v1273_v58 = vadd.f32 %v1272_v49, %v1271_v37  ;;  %v1283_v43 = vadd.f32 %v1243_v35, %v1241_v50  ;;  %v1485_v59 = vadd.f32 %v1222_v57, %v822_v56 }
 0x15a   : > { %v1267_v60 = vrot.slane %v1266_v53, 1  ;;  %v1277_v61 = vrot.slane %v1276_v54, 4  ;;  %v1244_v22 = vmul.f32 %v1484_v55, %v1865_v41 }
 0x15b   : > { %v1274_v62 = vrot.slane %v1273_v58, 1  ;;  %v1284_v63 = vrot.slane %v1283_v43, 4  ;;  %v828_v0 = vpop.f32.mrb[14].mxu1  ;;  %v1227_v3 = vpop.f32.mrb[14].mxu0  ;;  %v1245_v44 = vmul.f32 %v1485_v59, %v1869_v45 }
 0x15c   : > { %v1268_v5 = vadd.f32 %v1267_v60, %v1266_v53  ;;  %v1278_v6 = vadd.f32 %v1277_v61, %v1276_v54  ;;  %v1486_v7 = vadd.f32 %v1227_v3, %v828_v0  ;;  %v830_v8 = vpop.f32.mrb[15].mxu1  ;;  %v1229_v10 = vpop.f32.mrb[15].mxu0 }
 0x15d   : > { %v1275_v12 = vadd.f32 %v1274_v62, %v1273_v58  ;;  %v1285_v19 = vadd.f32 %v1284_v63, %v1283_v43  ;;  %v1487_v9 = vadd.f32 %v1229_v10, %v830_v8 }
 0x15e   : > { %v1279_v15 = vrot.slane %v1278_v6, 2  ;;  %v1246_v29 = vmul.f32 %v1486_v7, %v1867_v42 }
 0x15f   : > { %v1313_v30 = vcombine.low %v1268_v5, %v1275_v12  ;;  %v1286_v36 = vrot.slane %v1285_v19, 2  ;;  %v1247_v4 = vmul.f32 %v1487_v9, %v1871_v48 }
 0x160   : > { %v1280_v1 = vadd.f32 %v1279_v15, %v1278_v6  ;;  %v1290_v13 = vadd.f32 %v1246_v29, %v1244_v22 }
 0x161   : > { %v1316_v14 = vrot.slane %v1313_v30, 7  ;;  %v1287_v16 = vadd.f32 %v1286_v36, %v1285_v19  ;;  %v1297_v21 = vadd.f32 %v1247_v4, %v1245_v44 }
 0x162   : > { %v1281_v23 = vrot.slane %v1280_v1, 1  ;;  %v1291_v24 = vrot.slane %v1290_v13, 4 }
 0x163   : > { %v1318_v18 = vsel %vm1317_vm1, %v1316_v14, %v1312_v47  ;;  %v1288_v25 = vrot.slane %v1287_v16, 1  ;;  %v1298_v41 = vrot.slane %v1297_v21, 4 }
 0x164   : > { %v1320_v26 = vsel %vm1319_vm2, %v1316_v14, %v1318_v18  ;;  %v1282_v42 = vadd.f32 %v1281_v23, %v1280_v1  ;;  %v1292_v17 = vadd.f32 %v1291_v24, %v1290_v13 }
 0x165   : > { %v1289_v2 = vadd.f32 %v1288_v25, %v1287_v16  ;;  %v1299_v45 = vadd.f32 %v1298_v41, %v1297_v21 }
 0x166   : > { %v1293_v27 = vrot.slane %v1292_v17, 2 }
 0x167   : > { %v1314_v48 = vcombine.low %v1282_v42, %v1289_v2  ;;  %v1300_v11 = vrot.slane %v1299_v45, 2 }
 0x168   : > { %v1294_v28 = vadd.f32 %v1293_v27, %v1292_v17 }
 0x169   : > { %v1321_v31 = vrot.slane %v1314_v48, 6  ;;  %v1301_v32 = vadd.f32 %v1300_v11, %v1299_v45 }
 0x16a   : > { %v1295_v20 = vrot.slane %v1294_v28, 1 }
 0x16b   : > { %v1323_v33 = vsel %vm1322_vm3, %v1321_v31, %v1320_v26  ;;  %v1302_v34 = vrot.slane %v1301_v32, 1 }
 0x16c   : > { %v1325_v37 = vsel %vm1324_vm4, %v1321_v31, %v1323_v33  ;;  %v1296_v38 = vadd.f32 %v1295_v20, %v1294_v28 }
 0x16d   : > { %v1303_v39 = vadd.f32 %v1302_v34, %v1301_v32 }
 0x16f   : > { %v1315_v40 = vcombine.low %v1296_v38, %v1303_v39 }
 0x171   : > { %v1326_v46 = vrot.slane %v1315_v40, 5 }
 0x173   : > { %v1328_v47 = vsel %vm1327_vm5, %v1326_v46, %v1325_v37 }
 0x174   : > { %v1330_v49 = vsel %vm1329_vm6, %v1326_v46, %v1328_v47 }
 0x175   : > { %1332 = vst [vmem:[%s201_s24] sm:$0xff] %v1330_v49 }
 0x176 PF: > { %s12_s11 = sadd.s32 1, %s1601_s11   ;;  %s1905_s9 = smov %s1597_s10 }
 0x177   : > { %p9_p5 = scmp.ge.s32.totalorder %s12_s11, 4   ;;  %s1906_s10 = smov %s1908_s12 }
 0x179   :  { %11 = sbr.rel (!%p9_p5) target bundleno = 2 (0x2), region = 61 }

</bundles_post_ra>
